<compile_context>
chip_gen: v6e
topology: v6e:2x2x1
jax: 0.10.0
libtpu: 0.0.40
codegen_flags: <defaults>
</compile_context>

<pallas_src>
import jax
import jax.numpy as jnp
from jax.experimental import pallas as pl
from jax.experimental.pallas import tpu as pltpu


def _round_up(x, m):
    return ((x + m - 1) // m) * m


def mlp_logsigmoid_kernel(xt_ref, w1_ref, w2_ref, b2_ref, o_ref):
    # xt_ref : (dim+1, B_tile)  activation^T, batch on lanes, trailing ones row
    # w1_ref : (q_p, dim+1)     layer-1 weight with b1 folded in as last column
    # w2_ref : (1, q_p)         layer-2 weight row (zero padded past q_1)
    # b2_ref : (1,) in SMEM     layer-2 bias scalar
    # o_ref  : (1, B_tile)      logsigmoid output, lane-dense

    # Layer 1 + bias on the MXU: (q_p, dim+1) @ (dim+1, B_tile) -> (q_p, B_tile)
    h = jnp.dot(w1_ref[...], xt_ref[...], preferred_element_type=jnp.float32)
    h = jnp.maximum(h, 0.0)                                  # ReLU (VPU)

    # Layer 2 also on the MXU (it is <2% utilized): (1, q_p) @ (q_p, B_tile)
    z = jnp.dot(w2_ref[...], h, preferred_element_type=jnp.float32) + b2_ref[0]

    # Numerically stable LogSigmoid: min(z, 0) - log1p(exp(-|z|))
    o_ref[...] = jnp.minimum(z, 0.0) - jnp.log1p(jnp.exp(-jnp.abs(z)))


def prepare_params(w1, b1, w2, b2):
    """One-time parameter preparation (hoisted out of the forward path).

    PyTorch nn.Linear shapes: w1 (q_1, dim), b1 (q_1,), w2 (1, q_1), b2 (1,).
    """
    w1 = jnp.asarray(w1, jnp.float32)
    b1 = jnp.asarray(b1, jnp.float32)
    w2 = jnp.asarray(w2, jnp.float32)
    b2 = jnp.asarray(b2, jnp.float32)

    q_1, dim = w1.shape
    q_p = _round_up(q_1, 8)                      # sublane-align hidden dim

    # Fold b1 into W1 as an extra column; the activation carries a ones row.
    w1b = jnp.concatenate([w1, b1.reshape(q_1, 1)], axis=1)          # (q_1, dim+1)
    w1_p = jnp.zeros((q_p, dim + 1), jnp.float32).at[:q_1, :].set(w1b)
    # Layer-2 weight as a lane row for an MXU (1, q_p) @ (q_p, bt) matmul.
    w2_p = jnp.zeros((1, q_p), jnp.float32).at[0, :q_1].set(w2.reshape(-1))
    b2_p = b2.reshape(1)                                             # SMEM scalar
    return dict(w1=w1_p, w2=w2_p, b2=b2_p, dim=dim, q_p=q_p)


def stopping_determine_forward(x, params):
    """x: (B, dim) float32 -> (B, 1) float32."""
    x = jnp.asarray(x, jnp.float32)
    B = x.shape[0]
    dim = params["dim"]
    q_p = params["q_p"]

    LANE = 128
    BT_MAX = 16384      # lanes per batch tile; keeps VMEM ~3 MiB (safe on v5e)
    MIN_SPLIT = 4096    # only split into >=2 tiles (v7x megacore) when worthwhile

    B_pad = _round_up(B, LANE)
    num_tiles = pl.cdiv(B_pad, BT_MAX)
    if num_tiles < 2 and B_pad >= 2 * MIN_SPLIT:
        num_tiles = 2                            # give both v7x TCs a tile
    bt = _round_up(pl.cdiv(B_pad, num_tiles), LANE)   # evenly-divided tiles
    num_tiles = pl.cdiv(B_pad, bt)
    B_pad = num_tiles * bt

    # Batch-on-lanes activation: x^T plus a ones row (bias fold), single pad on
    # the lane axis. With allow_input_fusion this can fuse into the operand DMA
    # instead of a separate HBM round trip.
    xt = jnp.concatenate([x.T, jnp.ones((1, B), jnp.float32)], axis=0)   # (dim+1, B)
    xt = jnp.pad(xt, ((0, 0), (0, B_pad - B)))                           # (dim+1, B_pad)

    out = pl.pallas_call(
        mlp_logsigmoid_kernel,
        out_shape=jax.ShapeDtypeStruct((1, B_pad), jnp.float32),
        grid=(num_tiles,),
        in_specs=[
            # Activation tile: second-to-last dim equals the full array extent,
            # so no HBM sublane padding is needed (Mosaic pads in VMEM).
            pl.BlockSpec((dim + 1, bt), lambda i: (0, i)),
            pl.BlockSpec((q_p, dim + 1), lambda i: (0, 0)),   # W1+b1 (resident)
            pl.BlockSpec((1, q_p), lambda i: (0, 0)),         # w2 row (resident)
            pl.BlockSpec(memory_space=pltpu.SMEM),            # b2 scalar
        ],
        out_specs=pl.BlockSpec((1, bt), lambda i: (0, i)),
        compiler_params=pltpu.CompilerParams(
            dimension_semantics=("parallel",),                # use both TCs on v7x
            allow_input_fusion=[True, False, False, False],   # fuse xt producer
        ),
    )(xt, params["w1"], params["w2"], params["b2"])

    # Undo the transpose / padding (cheap slice + reshape in the wrapper).
    return out[0, :B].reshape(B, 1)


def _reference(x, w1, b1, w2, b2):
    h = jnp.maximum(x @ w1.T + b1, 0.0)
    z = h @ w2.T + b2
    return jnp.minimum(z, 0.0) - jnp.log1p(jnp.exp(-jnp.abs(z)))


if __name__ == "__main__":
    # Module config consistent with the PyTorch script: dim = 5, pick q_1 = 32.
    dim = 5
    q_1 = 32

    key = jax.random.PRNGKey(0)
    kx, kw1, kb1, kw2, kb2, kx2, kx3 = jax.random.split(key, 7)

    w1 = jax.random.normal(kw1, (q_1, dim), dtype=jnp.float32) * 0.1
    b1 = jax.random.normal(kb1, (q_1,), dtype=jnp.float32) * 0.1
    w2 = jax.random.normal(kw2, (1, q_1), dtype=jnp.float32) * 0.1
    b2 = jax.random.normal(kb2, (1,), dtype=jnp.float32) * 0.1

    params = prepare_params(w1, b1, w2, b2)   # hoisted, done once
    fwd = jax.jit(lambda xx: stopping_determine_forward(xx, params))

    # Small batch (pads 8 -> 128 lanes).
    x_a = jax.random.normal(kx, (8, dim), dtype=jnp.float32)
    out_a = jax.block_until_ready(fwd(x_a))
    ref_a = _reference(x_a, w1, b1, w2, b2)
    assert out_a.shape == (8, 1)
    assert jnp.allclose(out_a, ref_a, atol=3e-5, rtol=3e-5)

    # Non-multiple-of-128 batch (exercises lane padding + slice-off).
    x_b = jax.random.normal(kx2, (300, dim), dtype=jnp.float32)
    out_b = jax.block_until_ready(fwd(x_b))
    ref_b = _reference(x_b, w1, b1, w2, b2)
    assert out_b.shape == (300, 1)
    assert jnp.allclose(out_b, ref_b, atol=3e-5, rtol=3e-5)

    # Larger batch exercises the multi-tile (grid > 1, megacore) path.
    x_c = jax.random.normal(kx3, (9000, dim), dtype=jnp.float32)
    out_c = jax.block_until_ready(fwd(x_c))
    ref_c = _reference(x_c, w1, b1, w2, b2)
    assert out_c.shape == (9000, 1)
    assert jnp.allclose(out_c, ref_c, atol=3e-5, rtol=3e-5)

    print("KERNEL_OK")
</pallas_src>

<mosaic_0001>
module attributes {stable_mosaic.version = 11 : i64} {
  func.func @mlp_logsigmoid_kernel(%arg0: i32, %arg1: memref<6x128xf32, #tpu.memory_space<vmem>>, %arg2: memref<32x6xf32, #tpu.memory_space<vmem>>, %arg3: memref<1x32xf32, #tpu.memory_space<vmem>>, %arg4: memref<1xf32, #tpu.memory_space<smem>>, %arg5: memref<1x128xf32, #tpu.memory_space<vmem>>) attributes {dimension_semantics = [#tpu.dimension_semantics<parallel>], iteration_bounds = array<i64: 1>, scalar_prefetch = 0 : i64, scratch_operands = 0 : i64, tpu.core_type = #tpu.core_type<tc>, window_params = [{transform_indices = @transform_0, window_bounds = array<i64: 6, 128>}, {pipeline_mode = #tpu.pipeline_mode<synchronous>, transform_indices = @transform_1, window_bounds = array<i64: 32, 6>}, {pipeline_mode = #tpu.pipeline_mode<synchronous>, transform_indices = @transform_2, window_bounds = array<i64: 1, 32>}, {transform_indices = @transform_3, window_bounds = array<i64: 1>}, {transform_indices = @transform_4, window_bounds = array<i64: 1, 128>}]} {
    %c0 = arith.constant 0 : index
    %c0_0 = arith.constant 0 : index
    %0 = vector.load %arg2[%c0, %c0_0] : memref<32x6xf32, #tpu.memory_space<vmem>>, vector<32x6xf32>
    %c0_1 = arith.constant 0 : index
    %c0_2 = arith.constant 0 : index
    %1 = vector.load %arg1[%c0_1, %c0_2] : memref<6x128xf32, #tpu.memory_space<vmem>>, vector<6x128xf32>
    %cst = arith.constant dense<0.000000e+00> : vector<32x128xf32>
    %2 = tpu.matmul %0, %1, %cst {dimension_numbers = #tpu.dot_dimension_numbers<[1], [0], [0], [1], [0, 0, 1, 1], [], []>} : vector<32x6xf32>, vector<6x128xf32>, vector<32x128xf32> -> vector<32x128xf32>
    %cst_3 = arith.constant 0.000000e+00 : f32
    %3 = vector.broadcast %cst_3 : f32 to vector<32x128xf32>
    %4 = arith.maximumf %2, %3 : vector<32x128xf32>
    %c0_4 = arith.constant 0 : index
    %c0_5 = arith.constant 0 : index
    %5 = vector.load %arg3[%c0_4, %c0_5] : memref<1x32xf32, #tpu.memory_space<vmem>>, vector<1x32xf32>
    %cst_6 = arith.constant dense<0.000000e+00> : vector<1x128xf32>
    %6 = tpu.matmul %5, %4, %cst_6 {dimension_numbers = #tpu.dot_dimension_numbers<[1], [0], [0], [1], [0, 0, 1, 1], [], []>} : vector<1x32xf32>, vector<32x128xf32>, vector<1x128xf32> -> vector<1x128xf32>
    %c0_7 = arith.constant 0 : index
    %7 = memref.load %arg4[%c0_7] : memref<1xf32, #tpu.memory_space<smem>>
    %8 = vector.broadcast %7 : f32 to vector<1x128xf32>
    %9 = arith.addf %6, %8 : vector<1x128xf32>
    %cst_8 = arith.constant 0.000000e+00 : f32
    %10 = vector.broadcast %cst_8 : f32 to vector<1x128xf32>
    %11 = arith.minimumf %9, %10 : vector<1x128xf32>
    %12 = math.absf %9 : vector<1x128xf32>
    %cst_9 = arith.constant 0.000000e+00 : f32
    %13 = vector.broadcast %cst_9 : f32 to vector<1x128xf32>
    %14 = arith.subf %13, %12 : vector<1x128xf32>
    %15 = math.exp %14 : vector<1x128xf32>
    %16 = math.log1p %15 : vector<1x128xf32>
    %17 = arith.subf %11, %16 : vector<1x128xf32>
    %c0_10 = arith.constant 0 : index
    %c0_11 = arith.constant 0 : index
    %18 = vector.load %arg5[%c0_10, %c0_11] : memref<1x128xf32, #tpu.memory_space<vmem>>, vector<1x128xf32>
    tpu.vector_store %arg5[%c0_10, %c0_11], %17 {strides = array<i32>} : memref<1x128xf32, #tpu.memory_space<vmem>>, vector<1x128xf32>,
    return
  }
  func.func @transform_0(%arg0: i32) -> (i32, i32) {
    %c0_i32 = arith.constant 0 : i32
    %c0_i32_0 = arith.constant 0 : i32
    return %c0_i32, %arg0 : i32, i32
  }
  func.func @transform_1(%arg0: i32) -> (i32, i32) {
    %c0_i32 = arith.constant 0 : i32
    %c0_i32_0 = arith.constant 0 : i32
    %c0_i32_1 = arith.constant 0 : i32
    return %c0_i32, %c0_i32_0 : i32, i32
  }
  func.func @transform_2(%arg0: i32) -> (i32, i32) {
    %c0_i32 = arith.constant 0 : i32
    %c0_i32_0 = arith.constant 0 : i32
    %c0_i32_1 = arith.constant 0 : i32
    return %c0_i32, %c0_i32_0 : i32, i32
  }
  func.func @transform_3(%arg0: i32) -> i32 {
    %c0_i32 = arith.constant 0 : i32
    %c0_i32_0 = arith.constant 0 : i32
    return %c0_i32 : i32
  }
  func.func @transform_4(%arg0: i32) -> (i32, i32) {
    %c0_i32 = arith.constant 0 : i32
    %c0_i32_0 = arith.constant 0 : i32
    return %c0_i32, %arg0 : i32, i32
  }
}

</mosaic_0001>

<bundles_post_ra>
// kernel: _lambda_.2
= control target key start
LH: loop header
LB: loop body
LE: loop exit
PB: predicated region body
PF: predicated region fallthrough
CT: control target
= control target key end

     0   :  { %s413_s0 = inlined_call_operand.hbm [shape: f32[32,6], index: 0, kind: input, shape index: {}]   ;;  %s414_s1 = inlined_call_operand.vmem [shape: f32[1,32], index: 1, kind: input, shape index: {}]   ;;  %s415_s2 = inlined_call_operand.<no memory space> [shape: f32[1], index: 2, kind: input, shape index: {}]   ;;  %s416_s3 = inlined_call_operand.vmem [shape: f32[5,8], index: 3, kind: input, shape index: {}]   ;;  %s417_s4 = inlined_call_operand.<no memory space> [shape: f32[], index: 4, kind: input, shape index: {}]   ;;  %s418_s5 = inlined_call_operand.<no memory space> [shape: f32[], index: 5, kind: input, shape index: {}]   ;;  %s419_s6 = inlined_call_operand.<no memory space> [shape: s32[], index: 6, kind: input, shape index: {}]   ;;  %s420_s7 = inlined_call_operand.vmem [shape: f32[1,128], index: 7, kind: output, shape index: {}]  }
   0x1   :  { %v12_v0 = vstv %s417_s4  ;;  %v13_v1 = vstv %s418_s5  ;;  %v14_v2 = vstv %s419_s6 }
   0x2   :  { %16 = vsyncpa [#allocation9], 0  ;;  %s340_s30 = smov [#allocation8]  }
   0x3   :  { %s24_s8 = sshll.u32 %s340_s30, 4  ;;  %s25_s8 = int_to_ptr.vmem [resolvable:$true] %s24_s8 }
   0x4   :  { %s326_s9 = scalar_lea.vmem %s25_s8, 512  ;;  %p331_p1 = scmp.lt.s32.totalorder %s25_s8, %s25_s8 }
   0x5   :  { %p327_p0 = scmp.ne.s32.totalorder %s25_s8, %s326_s9  ;;  %p332_p2 = scmp.lt.s32.totalorder %s326_s9, %s326_s9 }
   0x7   :  { %p333_p3 = por %p332_p2, %p331_p1 }
   0x9   :  { %p334_p4 = pnand %p333_p3, %p327_p0 }
   0xb   :  { %337 = shalt.err (!%p334_p4)
}
   0xc   :  { %s341_s4 = smov 128   ;;  %s342_s10 = smov 8  }
   0xd   :  { %30 = dma.hbm_to_vmem [thread:$0]  %s413_s0, 512, %s25_s8, [#allocation9], %s341_s4, %s341_s4, %s342_s10  }
   0xe   :  { %338 = dma.done.wait [#allocation9], 512  }
   0xf   :  { %339 = vsyncadd [#allocation9], 4294966784  ;;  %v39_v3 = vlaneseq  ;;  %vm70_vm1 = vcmask 48128   ;;  %v38_v6 = vld [vmem:[%s416_s3] sm:$0x1f]  ;;  %vm83_vm4 = vcmask 1045504   ;;  %v178_v25 = vstv %s415_s2 }
  0x10   :  { %v65_v7 = vld [vmem:[#allocation8] sm:$0xff]  ;;  %v66_v12 = vld [vmem:[#allocation8 + $0x8] sm:$0xff]  ;;  %v67_v13 = vld [vmem:[#allocation8 + $0x10] sm:$0xff]  ;;  %v343_v15 = vmov 0.0   ;;  %vm344_vm5 = vmmov 0   ;;  %vm179_vm6 = vcmask 261120  }
  0x11   :  { %v40_v4 = vshrl.u32 %v39_v3, 7  ;;  %v45_v5 = vand.u32 127, %v39_v3  ;;  %292 = vmatprep.mubr.msk.f32.mxu0 %vm70_vm1, %v65_v7  ;;  %v68_v14 = vld [vmem:[#allocation8 + $0x18] sm:$0xff]  ;;  %298 = vmatprep.subr.mxu1 %v343_v15  ;;  %v176_v24 = vld [vmem:[%s414_s1] sm:$0x1] }
  0x12   :  { %306 = vmatprep.mubr.msk.f32.mxu1 %vm344_vm5, %v343_v15 }
  0x13   :  { %vm42_vm0 = vcmp.lt.s32.totalorder %v40_v4, 5  ;;  %vm47_vm2 = vcmp.lt.s32.totalorder %v45_v5, 8  ;;  %vm55_vm3 = vcmp.lt.s32.totalorder %v45_v5, %v14_v2 }
  0x14   :  { %v43_v8 = vsel %vm42_vm0, %v38_v6, %v12_v0 }
  0x15   :  { %v48_v9 = vsel %vm47_vm2, %v43_v8, %v12_v0 }
  0x16   :  { %v60_v10 = vsel %vm55_vm3, %v48_v9, %v13_v1 }
  0x17   :  { %64 = vst [vmem:[#allocation10] sm:$0xff] %v60_v10 }
  0x1e   :  { %v69_v11 = vld [vmem:[#allocation10] sm:$0x3f] }
  0x1f   :  { %290 = vmatprep.subr.msk.mxu0 %vm83_vm4, %v69_v11 }
  0x20   :  { %291 = vmatpush3.msk.msra.mxu0 %vm83_vm4, %v69_v11 }
  0x21   :  { %293 = vmatmul.mubr.msk.f32.vlgmr.msra.gmra.mxu0 %vm70_vm1, %v66_v12 }
  0x22   :  { %295 = vmatprep.mubr.msk.f32.mxu0 %vm70_vm1, %v67_v13 }
  0x25   :  { %296 = vmatmul.mubr.msk.f32.gmra.mxu0 %vm70_vm1, %v68_v14 }
  0xe1   :  { %v294_v16 = vpop.f32.mrf.mxu0 }
  0xe2   :  { %v173_v22 = vmax.f32 %v294_v16, 0.0 }
  0xe3   :  { %v153_v17 = vpop.f32.mrf.mxu0 }
  0xe4   :  { %v172_v23 = vmax.f32 %v153_v17, 0.0 }
  0xe5   :  { %v297_v18 = vpop.f32.mrf.mxu0 }
  0xe6   :  { %v175_v19 = vmax.f32 %v297_v18, 0.0 }
  0xe7   :  { %v163_v20 = vpop.f32.mrf.mxu0 }
  0xe8   :  { %v174_v21 = vmax.f32 %v163_v20, 0.0  ;;  %299 = vmatpush3.msra.mxu1 %v175_v19 }
  0xe9   :  { %300 = vmatprep.subr.mxu1 %v343_v15 }
  0xea   :  { %301 = vmatpush3.msra.mxu1 %v174_v21 }
  0xeb   :  { %302 = vmatprep.subr.mxu1 %v343_v15 }
  0xec   :  { %303 = vmatpush3.msra.mxu1 %v173_v22 }
  0xed   :  { %304 = vmatprep.subr.mxu1 %v343_v15 }
  0xee   :  { %305 = vmatpush3.msra.mxu1 %v172_v23 }
  0xef   :  { %307 = vmatmul.mubr.msk.f32.vlgmr.msra.gmra.mxu1 %vm179_vm6, %v176_v24 }
 0x1af   :  { %v249_v26 = vpop.f32.mrf.mxu1 }
 0x1b0   :  { %v250_v27 = vadd.f32 %v249_v26, %v178_v25 }
 0x1b1   :  { %v308_v28 = vpop.f32.mrf.mxu1 }
 0x1b2   :  { %v254_v29 = vand.u32 2147483647, %v250_v27  ;;  %v253_v40 = vmin.f32 %v250_v27, 0.0 }
 0x1b4   :  { %v255_v30 = vsub.f32 0.0, %v254_v29 }
 0x1b6   :  { %v256_v31 = vmul.f32 1.442695, %v255_v30 }
 0x1b8   :  { %314 = vpow2.f32 %v256_v31 }
 0x1c5   :  { %v315_v32 = vpop.eup %314 }
 0x1c6   :  { %v258_v33 = vadd.f32 1.0, %v315_v32  ;;  %v261_v34 = vmul.f32 -0.5, %v315_v32  ;;  %v264_v36 = vand.u32 2147483647, %v315_v32 }
 0x1c8   :  { %316 = vlog2.f32 %v258_v33  ;;  %v262_v35 = vadd.f32 1.0, %v261_v34  ;;  %vm265_vm7 = vcmp.lt.f32.partialorder %v264_v36, 0.0004427343 }
 0x1ca   :  { %v263_v39 = vmul.f32 %v315_v32, %v262_v35 }
 0x1d5   :  { %v317_v37 = vpop.eup %316 }
 0x1d6   :  { %v260_v38 = vmul.f32 0.6931472, %v317_v37 }
 0x1d8   :  { %v266_v41 = vsel %vm265_vm7, %v263_v39, %v260_v38 }
 0x1d9   :  { %v267_v42 = vsub.f32 %v253_v40, %v266_v41 }
 0x1db   :  { %268 = vst [vmem:[%s420_s7] sm:$0x1] %v267_v42 }
 0x1dc   :  { %273 = vsyncpa [#allocation9], 1 }

</bundles_post_ra>
